<compile_context>
chip_gen: v6e
topology: v6e:2x2x1
jax: 0.10.0
libtpu: 0.0.40
codegen_flags: <defaults>
</compile_context>

<pallas_src>
import jax
import jax.numpy as jnp
from jax import lax
from jax.experimental import pallas as pl
from jax.experimental.pallas import tpu as pltpu

_LANE = 128
_VMEM_INPUT_BUDGET_BYTES = 6 * 1024 * 1024   # per buffer set; x2 buffers = 12 MiB
_MIN_GRID_DEPTH = 8                           # keep >= ~8 steps for pipelining
_MIN_PALLAS_ELEMENTS = 1 << 20                # below this, XLA's fused reduce wins


def _round_up(x: int, m: int) -> int:
    return (x + m - 1) // m * m


def _sublane_multiple(*dtypes) -> int:
    # Packed sublane tile: (8,128) for 4-byte, (16,128) for 2-byte, (32,128)
    # for 1-byte dtypes.  Use the strictest requirement across the inputs.
    return max(max(8, 32 // jnp.dtype(d).itemsize) for d in dtypes)


def _grid_dim_semantics(num_blocks: int):
    # Only core-level semantics actually split a grid axis across v7x's two
    # TensorCores; the plain "parallel" string is a measured no-op.  Keep the
    # known-safe string on single-core v5e/v6e.
    try:
        kind = jax.devices()[0].device_kind
    except Exception:  # pragma: no cover - defensive
        kind = ""
    if "7" in kind and num_blocks >= 2 and num_blocks % 2 == 0 \
            and hasattr(pltpu, "CORE_PARALLEL"):
        return (pltpu.CORE_PARALLEL,)
    return ("parallel",)


def _elementwise_loss_f32(o, t, lv, b: float):
    """Elementwise loss in f32 math (shared by kernel, tail path, fallback)."""
    o = o.astype(jnp.float32)
    t = t.astype(jnp.float32)
    lv = lv.astype(jnp.float32)
    d = o - t
    res = d * d
    if b > 0:
        # (0.5*exp(-lv)*res + 0.5*lv) * exp(b*lv)
        #   == 0.5 * (res*exp((b-1)*lv) + lv*exp(b*lv))
        # weight == pow(coef.detach(), -b) == exp(b*lv); detach() is a no-op
        # for the forward pass.
        # TODO(synk): add a custom_vjp if this loss is differentiated --
        # PyTorch's .detach() means the weight must not receive gradients.
        return 0.5 * (res * jnp.exp((b - 1.0) * lv) + lv * jnp.exp(b * lv))
    return 0.5 * (jnp.exp(-lv) * res + lv)


def _make_partial_sum_kernel(b: float, rows: int, block_rows: int):
    """Per grid step: elementwise loss + sublane partial sum -> (1,1,128)."""
    need_mask = (rows % block_rows) != 0

    def kernel(o_ref, t_ref, lv_ref, psum_ref):
        loss = _elementwise_loss_f32(o_ref[...], t_ref[...], lv_ref[...], b)
        # Fast path (every step): unmasked sublane reduce only; the cross-lane
        # reduce and the single 1/N scale happen once, outside the kernel.
        psum_ref[...] = jnp.sum(loss, axis=0, keepdims=True)[None]
        if need_mask:
            # Only the final (padded) block pays the iota+compare+select cost.
            last = pl.num_programs(0) - 1

            @pl.when(pl.program_id(0) == last)
            def _():
                row_ids = last * block_rows + lax.broadcasted_iota(
                    jnp.int32, (block_rows, _LANE), 0)
                masked = jnp.where(row_ids < rows, loss, 0.0)
                psum_ref[...] = jnp.sum(masked, axis=0, keepdims=True)[None]

    return kernel


def weighted_variance_attenuation_loss(output, target, log_variance, b=0.5,
                                       *, min_pallas_elements=_MIN_PALLAS_ELEMENTS):
    """Pallas implementation of WeightedVarianceAttenuationLoss.forward."""
    assert output.shape == target.shape == log_variance.shape
    n = output.size
    b = float(b)

    if n < min_pallas_elements:
        # Tiny inputs: pallas_call launch + pipeline prologue dwarf the work.
        return jnp.mean(_elementwise_loss_f32(output, target, log_variance, b))

    # Contiguous ravel: metadata-only, native dtype preserved in HBM.
    flat_o = jnp.ravel(output)
    flat_t = jnp.ravel(target)
    flat_lv = jnp.ravel(log_variance)

    mult = _sublane_multiple(output.dtype, target.dtype, log_variance.dtype)
    rows_all = n // _LANE
    # If we can't even fill one packed sublane tile, do it all in the tail.
    n_main = rows_all * _LANE if rows_all >= mult else 0
    total = jnp.float32(0.0)

    if n_main > 0:
        rows = n_main // _LANE

        # Dtype-aware block sizing: ~6 MiB of input per step (2 MiB / f32
        # input), rounded to the packed sublane multiple, but no bigger than
        # needed to keep the grid >= _MIN_GRID_DEPTH steps deep.
        bytes_per_row = _LANE * sum(
            jnp.dtype(x.dtype).itemsize for x in (output, target, log_variance))
        max_rows = max(mult,
                       (_VMEM_INPUT_BUDGET_BYTES // bytes_per_row) // mult * mult)
        depth_rows = _round_up(pl.cdiv(rows, _MIN_GRID_DEPTH), mult)
        block_rows = max(mult, min(max_rows, depth_rows))
        num_blocks = pl.cdiv(rows, block_rows)

        def as_slab(x):
            # Prefix slice + reshape: a no-op when n % 128 == 0 (common case).
            return x[:n_main].reshape(rows, _LANE)

        kernel = _make_partial_sum_kernel(b, rows, block_rows)
        in_spec = pl.BlockSpec((block_rows, _LANE), lambda i: (i, 0))

        in_bytes = rows * _LANE * sum(
            jnp.dtype(x.dtype).itemsize for x in (output, target, log_variance))
        cost = pl.CostEstimate(
            flops=10 * rows * _LANE,
            transcendentals=(2 if b > 0 else 1) * rows * _LANE,
            bytes_accessed=in_bytes + num_blocks * _LANE * 4,
        )

        partials = pl.pallas_call(
            kernel,
            out_shape=jax.ShapeDtypeStruct((num_blocks, 1, _LANE), jnp.float32),
            grid_spec=pltpu.PrefetchScalarGridSpec(
                num_scalar_prefetch=0,
                grid=(num_blocks,),
                in_specs=[in_spec, in_spec, in_spec],
                out_specs=pl.BlockSpec((1, 1, _LANE), lambda i: (i, 0, 0)),
            ),
            compiler_params=pltpu.CompilerParams(
                dimension_semantics=_grid_dim_semantics(num_blocks),
                # 3 inputs x 2 buffers x <=2 MiB = <=12 MiB; set the limit
                # explicitly so v5e's 16 MiB scoped default is never a risk.
                vmem_limit_bytes=32 * 1024 * 1024,
            ),
            cost_estimate=cost,
        )(as_slab(flat_o), as_slab(flat_t), as_slab(flat_lv))
        total = total + jnp.sum(partials)

    if n_main < n:
        # Ragged (<128-element) remainder handled with plain JAX instead of
        # padding (padding would force an extra HBM copy of all three inputs).
        total = total + jnp.sum(_elementwise_loss_f32(
            flat_o[n_main:], flat_t[n_main:], flat_lv[n_main:], b))

    return total / jnp.float32(n)


def _reference(output, target, log_variance, b=0.5):
    """Pure-JAX reference matching the PyTorch forward exactly."""
    res = (output - target) ** 2
    coef = jnp.exp(-log_variance)
    loss = 0.5 * coef * res + 0.5 * log_variance
    if b > 0:
        weight = jnp.power(coef, -b)
        loss = loss * weight
    return jnp.mean(loss)


if __name__ == "__main__":
    key = jax.random.PRNGKey(0)

    # (shape, dtype, b)
    cases = [
        ((2, 4, 16, 16), jnp.float32, 0.5),   # NCHW demo: 2 blocks, no mask, no tail
        ((3, 5, 17, 19), jnp.float32, 0.5),   # ragged: masked last block + <128 tail
        ((4, 8, 64, 64), jnp.float32, 0.5),   # multiple grid blocks, parallel axis
        ((4, 8, 64, 64), jnp.bfloat16, 0.5),  # bf16: packed (16,128) sublane tiling
        ((2, 4, 16, 16), jnp.float32, 0.0),   # b == 0 branch
    ]
    for idx, (shape, dtype, b) in enumerate(cases):
        k1, k2, k3 = jax.random.split(jax.random.fold_in(key, idx), 3)
        output = jax.random.normal(k1, shape, dtype=jnp.float32).astype(dtype)
        target = jax.random.normal(k2, shape, dtype=jnp.float32).astype(dtype)
        log_variance = (0.5 * jax.random.normal(k3, shape, dtype=jnp.float32)
                        ).astype(dtype)

        # Force the Pallas path even at these small demo sizes.
        loss = weighted_variance_attenuation_loss(
            output, target, log_variance, b=b, min_pallas_elements=0)
        loss = jax.block_until_ready(loss)

        # Reference in f32 on the same (possibly bf16-quantized) values, since
        # the kernel upcasts to f32 internally.
        ref = _reference(output.astype(jnp.float32),
                         target.astype(jnp.float32),
                         log_variance.astype(jnp.float32), b=b)
        assert jnp.allclose(loss, ref, rtol=1e-5, atol=1e-6), \
            (shape, dtype, b, loss, ref)

    print("KERNEL_OK")
</pallas_src>

<mosaic_0001>
module attributes {stable_mosaic.version = 11 : i64} {
  func.func @kernel(%arg0: i32, %arg1: memref<8x128xf32, #tpu.memory_space<vmem>>, %arg2: memref<8x128xf32, #tpu.memory_space<vmem>>, %arg3: memref<8x128xf32, #tpu.memory_space<vmem>>, %arg4: memref<1x1x128xf32, #tpu.memory_space<vmem>>) attributes {dimension_semantics = [#tpu.dimension_semantics<parallel>], iteration_bounds = array<i64: 2>, scalar_prefetch = 0 : i64, scratch_operands = 0 : i64, tpu.core_type = #tpu.core_type<tc>, window_params = [{transform_indices = @transform_0, window_bounds = array<i64: 8, 128>}, {transform_indices = @transform_1, window_bounds = array<i64: 8, 128>}, {transform_indices = @transform_2, window_bounds = array<i64: 8, 128>}, {transform_indices = @transform_3, window_bounds = array<i64: 1, 1, 128>}]} {
    %c0 = arith.constant 0 : index
    %c0_0 = arith.constant 0 : index
    %0 = vector.load %arg1[%c0, %c0_0] : memref<8x128xf32, #tpu.memory_space<vmem>>, vector<8x128xf32>
    %c0_1 = arith.constant 0 : index
    %c0_2 = arith.constant 0 : index
    %1 = vector.load %arg2[%c0_1, %c0_2] : memref<8x128xf32, #tpu.memory_space<vmem>>, vector<8x128xf32>
    %c0_3 = arith.constant 0 : index
    %c0_4 = arith.constant 0 : index
    %2 = vector.load %arg3[%c0_3, %c0_4] : memref<8x128xf32, #tpu.memory_space<vmem>>, vector<8x128xf32>
    %3 = arith.subf %0, %1 : vector<8x128xf32>
    %4 = arith.mulf %3, %3 : vector<8x128xf32>
    %cst = arith.constant -5.000000e-01 : f32
    %5 = vector.broadcast %cst : f32 to vector<8x128xf32>
    %6 = arith.mulf %5, %2 : vector<8x128xf32>
    %7 = math.exp %6 : vector<8x128xf32>
    %8 = arith.mulf %4, %7 : vector<8x128xf32>
    %cst_5 = arith.constant 5.000000e-01 : f32
    %9 = vector.broadcast %cst_5 : f32 to vector<8x128xf32>
    %10 = arith.mulf %9, %2 : vector<8x128xf32>
    %11 = math.exp %10 : vector<8x128xf32>
    %12 = arith.mulf %2, %11 : vector<8x128xf32>
    %13 = arith.addf %8, %12 : vector<8x128xf32>
    %cst_6 = arith.constant 5.000000e-01 : f32
    %14 = vector.broadcast %cst_6 : f32 to vector<8x128xf32>
    %15 = arith.mulf %14, %13 : vector<8x128xf32>
    %cst_7 = arith.constant dense<0.000000e+00> : vector<128xf32>
    %16 = vector.multi_reduction <add>, %15, %cst_7 [0] : vector<8x128xf32> to vector<128xf32>
    %17 = vector.shape_cast %16 : vector<128xf32> to vector<1x128xf32>
    %18 = vector.shape_cast %17 : vector<1x128xf32> to vector<1x1x128xf32>
    %c0_8 = arith.constant 0 : index
    %c0_9 = arith.constant 0 : index
    %c0_10 = arith.constant 0 : index
    %19 = vector.load %arg4[%c0_8, %c0_9, %c0_10] : memref<1x1x128xf32, #tpu.memory_space<vmem>>, vector<1x1x128xf32>
    tpu.vector_store %arg4[%c0_8, %c0_9, %c0_10], %18 {strides = array<i32>} : memref<1x1x128xf32, #tpu.memory_space<vmem>>, vector<1x1x128xf32>,
    return
  }
  func.func @transform_0(%arg0: i32) -> (i32, i32) {
    %c0_i32 = arith.constant 0 : i32
    %c0_i32_0 = arith.constant 0 : i32
    return %arg0, %c0_i32 : i32, i32
  }
  func.func @transform_1(%arg0: i32) -> (i32, i32) {
    %c0_i32 = arith.constant 0 : i32
    %c0_i32_0 = arith.constant 0 : i32
    return %arg0, %c0_i32 : i32, i32
  }
  func.func @transform_2(%arg0: i32) -> (i32, i32) {
    %c0_i32 = arith.constant 0 : i32
    %c0_i32_0 = arith.constant 0 : i32
    return %arg0, %c0_i32 : i32, i32
  }
  func.func @transform_3(%arg0: i32) -> (i32, i32, i32) {
    %c0_i32 = arith.constant 0 : i32
    %c0_i32_0 = arith.constant 0 : i32
    %c0_i32_1 = arith.constant 0 : i32
    return %arg0, %c0_i32, %c0_i32_0 : i32, i32, i32
  }
}

</mosaic_0001>

<bundles_post_ra>
// kernel: tpu_custom_call.1
= control target key start
LH: loop header
LB: loop body
LE: loop exit
PB: predicated region body
PF: predicated region fallthrough
CT: control target
= control target key end

     0   :  { %s856_s0 = inlined_call_operand.hbm [shape: f32[16,128], index: 0, kind: input, shape index: {}]   ;;  %s857_s1 = inlined_call_operand.hbm [shape: f32[16,128], index: 1, kind: input, shape index: {}]   ;;  %s858_s2 = inlined_call_operand.hbm [shape: f32[16,128], index: 2, kind: input, shape index: {}]   ;;  %s859_s3 = inlined_call_operand.hbm [shape: f32[2,1,128], index: 3, kind: output, shape index: {}]  }
   0x1   :  { %863 = sst [smem:[#allocation13_spill]] %s856_s0 }
   0x2   :  { %864 = sst [smem:[#allocation14_spill]] %s857_s1 }
   0x3   :  { %8 = vsyncpa [#allocation3], 0 }
   0x4   :  { %10 = vsyncpa [#allocation3 + $0x1], 0 }
   0x5   :  { %11 = vsyncpa [#allocation6], 0 }
   0x6   :  { %13 = vsyncpa [#allocation6 + $0x1], 0 }
   0x7   :  { %14 = vsyncpa [#allocation4], 0 }
   0x8   :  { %16 = vsyncpa [#allocation4 + $0x1], 0  ;;  %s654_s12 = smov 0   ;;  %s656_s13 = smov 0  }
   0x9   :  { %s658_s14 = smov 0   ;;  %s660_s15 = smov 0  }
   0xa LB: > { %s675_s16 = sadd.s32 4294967295, %s628_s15   ;;  %s400_s17 = sadd.s32 4294967294, %s628_s15   ;;  %s628_s15 = sphi %s660_s15, %s885_s15   ;;  %s624_s14 = sphi %s658_s14, %s884_s14   ;;  %s620_s13 = sphi %s656_s13, %s883_s13   ;;  %s616_s12 = sphi %s654_s12, %s882_s12  }
   0xb   : > { %s679_s18 = sadd.s32 1, %s628_s15   ;;  %s29_s19 = sadd.s32 1, %s624_s14 }
   0xc   : > { %s26_s20 = ssub.s32 %s628_s15, %s679_s18  ;;  %p36_p0 = scmp.ne.s32.totalorder %s624_s14, %s620_s13 }
   0xd   : > { %p27_p1 = scmp.eq.s32.totalorder %s26_s20, 0  ;;  %p37_p2 = scmp.eq.s32.totalorder %s628_s15, 0 }
   0xe   : > { %p42_p3 = scmp.ne.s32.totalorder %s620_s13, %s616_s12  ;;  %p43_p4 = scmp.eq.s32.totalorder %s675_s16, 0 }
   0xf   : > { %s691_s21 = scalar_select %p27_p1, %s624_s14, %s29_s19  }
  0x10   : > { %p38_p5 = por %p37_p2, %p36_p0  ;;  %p693_p6 = por %p43_p4, %p42_p3 }
  0x11   : > { %865 = sst [smem:[#allocation12_spill]] %s691_s21  ;;  %p118_p7 = scmp.eq.s32.totalorder %s675_s16, 1 }
  0x12   : > { %s866_s22 = scalar_select %p693_p6, 1, 0 }
  0x13   : > { %p124_p8 = scmp.eq.s32.totalorder %s400_s17, 1  ;;  %p438_p10 = scmp.lt.s32.totalorder %s628_s15, 2 }
  0x14   : > { %p700_p11 = por %p118_p7, %p36_p0  ;;  %s860_s25 = sand.u32 1, %s624_s14  }
  0x15   : > { %p704_p12 = por %p124_p8, %p42_p3  ;;  %s710_s26 = sshll.u32 %s628_s15, 7 }
  0x16   : > { %s867_s23 = scalar_select %p700_p11, 1, 0 }
  0x17   : > { %s868_s24 = scalar_select %p704_p12, 1, 0 }
  0x18   : > { %s714_s27 = sshll.u32 %s860_s25, 3  ;;  %p716_p13 = pnand %p438_p10, %p38_p5 }
  0x19   : > { %s162_s29 = sand.u32 1, %s628_s15   ;;  %s870_s1 = sld [smem:[#allocation14_spill]] }
  0x1a   : > { %s166_s6 = scalar_lea.vmem [#allocation5], %s714_s27  ;;  %s729_s8 = scalar_lea.sflag [#allocation6], %s162_s29 }
  0x1b   : > { %s173_s7 = sshll.u32 %s166_s6, 4  ;;  %p735_p2 = pneg %p716_p13  ;;  %s174_s7 = int_to_ptr.vmem [resolvable:$true] %s173_s7 }
  0x1f   : > { %s725_s5 = scalar_lea.hbm %s870_s1, %s710_s26  ;;  %s481_s19 = scalar_lea.hbm %s870_s1, 256 }
  0x20   : > { %s476_s9 = scalar_lea.hbm %s725_s5, 128  ;;  %p482_p5 = scmp.lt.s32.totalorder %s725_s5, %s870_s1 }
  0x21   : > { %p477_p1 = scmp.ne.s32.totalorder %s725_s5, %s476_s9  ;;  %p483_p7 = scmp.lt.s32.totalorder %s481_s19, %s476_s9 }
  0x23   : > { %p479_p3 = pnand %p735_p2, %p477_p1  ;;  %p484_p8 = por %p483_p7, %p482_p5 }
  0x25   : > { %p480_p4 = pneg %p479_p3 }
  0x27   : > { %p485_p10 = pnand %p484_p8, %p480_p4 }
  0x29   : > { %488 = shalt.err (!%p485_p10)
}
  0x2a   : > { %s489_s29 = scalar_lea.vmem %s174_s7, 128  ;;  %s630_s4 = smov [#allocation5]  }
  0x2b   : > { %p490_p9 = scmp.ne.s32.totalorder %s174_s7, %s489_s29  ;;  %s494_s6 = sshll.u32 %s630_s4, 4  ;;  %s495_s6 = int_to_ptr.vmem [resolvable:$false] %s494_s6 }
  0x2c   : > { %s496_s25 = scalar_lea.vmem %s495_s6, 256  ;;  %p497_p1 = scmp.lt.s32.totalorder %s174_s7, %s495_s6 }
  0x2d   : > { %p492_p0 = pnand %p490_p9, %p735_p2  ;;  %p498_p3 = scmp.lt.s32.totalorder %s496_s25, %s489_s29 }
  0x2f   : > { %p493_p12 = pneg %p492_p0  ;;  %p499_p11 = por %p498_p3, %p497_p1 }
  0x31   : > { %p500_p6 = pnand %p499_p11, %p493_p12 }
  0x33   : > { %503 = shalt.err (!%p500_p6)
}
  0x34   : > { %430 = dma.hbm_to_vmem [thread:$0]  (!%p716_p13), %s725_s5, 128, %s174_s7, %s729_s8  }
  0x35   : > { %p196_p9 = scmp.lt.s32.totalorder %s628_s15, 3  ;;  %s872_s0 = sld [smem:[#allocation13_spill]] }
  0x36   : > { %p873_p0 = scmp.ge.s32.totalorder %s628_s15, 1  ;;  %s148_s19 = scalar_lea.vmem [#allocation2], %s714_s27 }
  0x37   : > { %s155_s20 = sshll.u32 %s148_s19, 4  ;;  %s875_s30 = sand.u32 1, %s624_s14   ;;  %s156_s20 = int_to_ptr.vmem [resolvable:$true] %s155_s20 }
  0x38   : > { %p763_p6 = pnand %p873_p0, %p196_p9  ;;  %s145_s29 = scalar_lea.sflag [#allocation3], %s875_s30 }
  0x3a   : > { %s874_s25 = scalar_select %p763_p6, 1, 0 }
  0x3b   : > { %s759_s17 = scalar_lea.hbm %s872_s0, %s710_s26  ;;  %s509_s6 = scalar_lea.hbm %s872_s0, 256 }
  0x3c   : > { %s504_s5 = scalar_lea.hbm %s759_s17, 128  ;;  %p510_p5 = scmp.lt.s32.totalorder %s759_s17, %s872_s0 }
  0x3d   : > { %p505_p11 = scmp.ne.s32.totalorder %s759_s17, %s504_s5  ;;  %p511_p7 = scmp.lt.s32.totalorder %s509_s6, %s504_s5 }
  0x3f   : > { %p507_p12 = pnand %p505_p11, %p735_p2  ;;  %p512_p8 = por %p511_p7, %p510_p5 }
  0x41   : > { %p508_p4 = pneg %p507_p12 }
  0x43   : > { %p513_p10 = pnand %p512_p8, %p508_p4 }
  0x45   : > { %516 = shalt.err (!%p513_p10)
}
  0x46   : > { %s517_s19 = scalar_lea.vmem %s156_s20, 128  ;;  %s631_s30 = smov [#allocation2]  }
  0x47   : > { %p518_p1 = scmp.ne.s32.totalorder %s156_s20, %s517_s19  ;;  %s522_s1 = sshll.u32 %s631_s30, 4  ;;  %s523_s1 = int_to_ptr.vmem [resolvable:$false] %s522_s1 }
  0x48   : > { %s524_s21 = scalar_lea.vmem %s523_s1, 256  ;;  %p525_p0 = scmp.lt.s32.totalorder %s156_s20, %s523_s1 }
  0x49   : > { %p520_p3 = pnand %p518_p1, %p735_p2  ;;  %p526_p11 = scmp.lt.s32.totalorder %s524_s21, %s517_s19 }
  0x4b   : > { %p521_p9 = pneg %p520_p3  ;;  %p527_p12 = por %p526_p11, %p525_p0 }
  0x4d   : > { %p528_p6 = pnand %p527_p12, %p521_p9 }
  0x4f   : > { %531 = shalt.err (!%p528_p6)
}
  0x50   : > { %427 = dma.hbm_to_vmem [thread:$0]  (!%p716_p13), %s759_s17, 128, %s156_s20, %s145_s29  }
  0x51   : > { %s189_s4 = scalar_lea.hbm %s858_s2, %s710_s26  ;;  %s184_s6 = scalar_lea.vmem [#allocation7], %s714_s27 }
  0x52   : > { %s191_s9 = sshll.u32 %s184_s6, 4  ;;  %s532_s11 = scalar_lea.hbm %s189_s4, 128  ;;  %s192_s9 = int_to_ptr.vmem [resolvable:$true] %s191_s9 }
  0x53   : > { %p533_p4 = scmp.ne.s32.totalorder %s189_s4, %s532_s11  ;;  %s537_s19 = scalar_lea.hbm %s858_s2, 256 }
  0x54   : > { %p538_p6 = scmp.lt.s32.totalorder %s189_s4, %s858_s2  ;;  %p539_p8 = scmp.lt.s32.totalorder %s537_s19, %s532_s11 }
  0x55   : > { %p535_p5 = pnand %p533_p4, %p735_p2 }
  0x56   : > { %p540_p10 = por %p539_p8, %p538_p6 }
  0x57   : > { %p536_p7 = pneg %p535_p5 }
  0x59   : > { %p541_p1 = pnand %p540_p10, %p536_p7 }
  0x5b   : > { %544 = shalt.err (!%p541_p1)
}
  0x5c   : > { %s545_s26 = scalar_lea.vmem %s192_s9, 128  ;;  %s632_s27 = smov [#allocation7]  }
  0x5d   : > { %p546_p3 = scmp.ne.s32.totalorder %s192_s9, %s545_s26  ;;  %s550_s17 = sshll.u32 %s632_s27, 4  ;;  %s551_s17 = int_to_ptr.vmem [resolvable:$false] %s550_s17 }
  0x5e   : > { %s552_s20 = scalar_lea.vmem %s551_s17, 256  ;;  %p553_p11 = scmp.lt.s32.totalorder %s192_s9, %s551_s17 }
  0x5f   : > { %p548_p9 = pnand %p546_p3, %p735_p2  ;;  %p554_p12 = scmp.lt.s32.totalorder %s552_s20, %s545_s26 }
  0x61   : > { %p549_p0 = pneg %p548_p9  ;;  %p555_p4 = por %p554_p12, %p553_p11 }
  0x63   : > { %p556_p5 = pnand %p555_p4, %p549_p0 }
  0x65   : > { %559 = shalt.err (!%p556_p5)
}
  0x66   : > { %433 = dma.hbm_to_vmem [thread:$0]  (!%p716_p13), %s189_s4, 128, %s192_s9, %s729_s8  }
  0x67   : > { %p876_p7 = scmp.ne.s32.totalorder %s874_s25, 0 }
  0x68   : > { %s807_s0 = sand.u32 (!%p876_p7), 1, %s620_s13   ;;  %p877_p2 = scmp.ne.s32.totalorder (!%p876_p7), %s866_s22, 0 }
  0x69   : > { %200 = sbr.rel (%p876_p7) target bundleno = 166 (0xa6), region = 32  ;;  %s410_s10 = sshll.u32 (!%p876_p7), %s807_s0, 3 }
  0x6a   : > { %s203_s29 = scalar_lea.sflag (!%p876_p7), [#allocation3], %s807_s0  ;;  %s206_s5 = scalar_lea.vmem (!%p876_p7), [#allocation2], %s410_s10 }
  0x6e   : > { %603 = dma.done.wait (%p877_p2), %s203_s29, 128  }
  0x6f   : > { %605 = vsyncadd (%p877_p2), %s203_s29, 4294967168  ;;  %s211_s28 = sand.u32 1, %s675_s16   ;;  %s215_s25 = scalar_lea.vmem [#allocation5], %s410_s10 }
  0x70   : > { %s212_s8 = scalar_lea.sflag [#allocation6], %s211_s28 }
  0x71   : > { %607 = dma.done.wait (%p877_p2), %s212_s8, 256  }
  0x72   : > { %609 = vsyncadd (%p877_p2), %s212_s8, 4294967040  ;;  %s224_s7 = scalar_lea.vmem [#allocation7], %s410_s10  ;;  %v256_v5 = vld [vmem:[%s206_s5] sm:$0xff]  ;;  %v257_v6 = vld [vmem:[%s215_s25] sm:$0xff]  ;;  %s255_s22 = scalar_lea.vmem [#allocation8], %s807_s0 }
  0x73   : > { %v258_v0 = vld [vmem:[%s224_s7] sm:$0xff]  ;;  %v259_v7 = vsub.f32 %v256_v5, %v257_v6  ;;  %s291_s4 = sshll.u32 %s255_s22, 4  ;;  %s413_s6 = sshll.u32 %s675_s16, 4  ;;  %s292_s4 = int_to_ptr.vmem [resolvable:$true] %s291_s4 }
  0x74   : > { %v261_v1 = vmul.f32 -0.5, %v258_v0  ;;  %v265_v2 = vmul.f32 0.5, %v258_v0  ;;  %s289_s1 = scalar_lea.hbm %s859_s3, %s413_s6  ;;  %s279_s21 = scalar_lea.sflag [#allocation4], %s807_s0 }
  0x75   : > { %v260_v8 = vmul.f32 %v259_v7, %v259_v7  ;;  %s560_s19 = scalar_lea.vmem %s292_s4, 16  ;;  %p878_p6 = scmp.ne.s32.totalorder %s867_s23, 0 }
  0x76   : > { %v262_v3 = vmul.f32 1.442695, %v261_v1  ;;  %v266_v4 = vmul.f32 1.442695, %v265_v2  ;;  %p561_p13 = scmp.ne.s32.totalorder %s292_s4, %s560_s19  ;;  %s633_s30 = smov [#allocation8]  }
  0x77   : > { %s564_s26 = sshll.u32 %s633_s30, 4  ;;  %s565_s26 = int_to_ptr.vmem [resolvable:$false] %s564_s26 }
  0x78   : > { %472 = vpow2.f32 %v262_v3  ;;  %p562_p8 = pnand %p561_p13, %p878_p6  ;;  %s566_s27 = scalar_lea.vmem %s565_s26, 32 }
  0x79   : > { %474 = vpow2.f32 %v266_v4  ;;  %p567_p1 = scmp.lt.s32.totalorder %s292_s4, %s565_s26  ;;  %p568_p3 = scmp.lt.s32.totalorder %s566_s27, %s560_s19 }
  0x7a   : > { %p563_p10 = pneg %p562_p8 }
  0x7b   : > { %p569_p9 = por %p568_p3, %p567_p1 }
  0x7d   : > { %p570_p0 = pnand %p569_p9, %p563_p10 }
  0x85   : > { %v473_v9 = vpop.eup %472 }
  0x86   : > { %v475_v10 = vpop.eup %474  ;;  %v264_v11 = vmul.f32 %v473_v9, %v260_v8 }
  0x87   : > { %v268_v12 = vmul.f32 %v475_v10, %v258_v0 }
  0x89   : > { %v269_v13 = vadd.f32 %v268_v12, %v264_v11 }
  0x8b   : > { %v270_v14 = vmul.f32 0.5, %v269_v13 }
  0x8d   : > { %v271_v15 = vrot.slane %v270_v14, 4 }
  0x8f   : > { %v272_v16 = vadd.f32 %v271_v15, %v270_v14 }
  0x91   : > { %v273_v17 = vrot.slane %v272_v16, 2 }
  0x93   : > { %v274_v18 = vadd.f32 %v273_v17, %v272_v16 }
  0x95   : > { %v275_v19 = vrot.slane %v274_v18, 1 }
  0x97   : > { %v276_v20 = vadd.f32 %v275_v19, %v274_v18 }
  0x99   : > { %277 = vst [vmem:[%s255_s22] sm:$0x1] %v276_v20 }
  0x9a   : > { %573 = shalt.err (!%p570_p0)
}
  0x9b   : > { %s574_s16 = scalar_lea.hbm %s289_s1, 16  ;;  %s578_s0 = scalar_lea.hbm %s859_s3, 32 }
  0x9c   : > { %p575_p11 = scmp.ne.s32.totalorder %s289_s1, %s574_s16  ;;  %p579_p5 = scmp.lt.s32.totalorder %s289_s1, %s859_s3 }
  0x9d   : > { %p580_p7 = scmp.lt.s32.totalorder %s578_s0, %s574_s16 }
  0x9e   : > { %p576_p12 = pnand %p575_p11, %p878_p6 }
  0x9f   : > { %p581_p2 = por %p580_p7, %p579_p5 }
  0xa0   : > { %p577_p4 = pneg %p576_p12 }
  0xa2   : > { %p582_p13 = pnand %p581_p2, %p577_p4 }
  0xa4   : > { %585 = shalt.err (!%p582_p13)
}
  0xa5   : > { %422 = dma.vmem_to_hbm [thread:$0]  (%p878_p6), %s292_s4, 16, %s289_s1, %s279_s21  }
  0xa6 PF: > { %s303_s5 = sand.u32 1, %s616_s12   ;;  %p879_p8 = scmp.ne.s32.totalorder %s868_s24, 0 }
  0xa7   : > { %p880_p10 = scmp.ge.s32.totalorder %s628_s15, 2  ;;  %s304_s28 = scalar_lea.sflag [#allocation4], %s303_s5 }
  0xa9   : > { %p435_p1 = pnand %p880_p10, %p879_p8 }
  0xab   : > { %p436_p3 = pneg %p435_p1 }
  0xad   : > { %611 = dma.done.wait (%p436_p3), %s304_s28, 16  }
  0xae   : > { %613 = vsyncadd (%p436_p3), %s304_s28, 4294967280  ;;  %s881_s8 = sld [smem:[#allocation12_spill]]  ;;  %p19_p9 = scmp.ge.s32.totalorder %s679_s18, 4  }
  0xaf   : > { %s882_s12 = smov %s620_s13  ;;  %s883_s13 = smov %s624_s14 }
  0xb0   : > { %s885_s15 = smov %s679_s18  ;;  %21 = sbr.rel (!%p19_p9) target bundleno = 10 (0xa), region = 101 }
  0xb4   : > { %s884_s14 = smov %s881_s8 }
  0xb5   :  { %308 = vsyncpa [#allocation3], 1 }
  0xb6   :  { %310 = vsyncpa [#allocation3 + $0x1], 1 }
  0xb7   :  { %311 = vsyncpa [#allocation6], 1 }
  0xb8   :  { %313 = vsyncpa [#allocation6 + $0x1], 1 }
  0xb9   :  { %314 = vsyncpa [#allocation4], 1 }
  0xba   :  { %316 = vsyncpa [#allocation4 + $0x1], 1 }

</bundles_post_ra>
